<compile_context>
chip_gen: v5e
topology: v5e:2x2
jax: 0.10.0
libtpu: 0.0.40
codegen_flags: <defaults>
</compile_context>

<pallas_src>
from typing import NamedTuple

import jax
import jax.numpy as jnp
from jax.experimental import pallas as pl
from jax.experimental.pallas import tpu as pltpu

LANE = 128


def _round_up(x: int, m: int) -> int:
    return ((x + m - 1) // m) * m


def _make_dnn_kernel(num_layers: int, norm: bool):
    """Kernel closure: (x_ref, w0, b0, w1, b1, ..., out_ref)."""

    def kernel(x_ref, *refs):
        out_ref = refs[-1]
        params = refs[:-1]

        hf = x_ref[...].astype(jnp.float32)
        if norm:
            # F.normalize(x, p=2, dim=1, eps=1e-12): x / max(||x||_2, 1e-12).
            # eps**2 under the max + rsqrt (EUP slot) reproduces this exactly.
            # Zero-padded lanes contribute nothing to the norm.
            sumsq = jnp.sum(hf * hf, axis=-1, keepdims=True)
            hf = hf * jax.lax.rsqrt(jnp.maximum(sumsq, 1e-24))
        # Dropout: eval mode -> identity (no-op).
        h_bf16 = hf.astype(jnp.bfloat16)

        for l in range(num_layers):
            w = params[2 * l][...]                           # bf16 (din_p, dout_p)
            b = params[2 * l + 1][...].astype(jnp.float32)   # f32  (1, dout_p)
            # bf16 x bf16 -> f32 accumulate on the MXU.
            acc = jnp.dot(h_bf16, w, preferred_element_type=jnp.float32) + b
            if l != num_layers - 1:
                h_bf16 = jnp.tanh(acc).astype(jnp.bfloat16)  # f32 tanh (EUP)
            else:
                out_ref[...] = acc.astype(out_ref.dtype)

    return kernel


class PreparedDNNParams(NamedTuple):
    w_pad: tuple      # per-layer bf16 (din_pad, dout_pad), lane-padded
    b_pad: tuple      # per-layer f32  (1, dout_pad), lane-padded
    dims: tuple       # true layer widths
    dims_pad: tuple   # 128-padded layer widths


def prepare_dnn_params(weights, biases) -> PreparedDNNParams:
    """One-time preprocessing: cast weights to bf16, biases to f32, and pad
    every layer width to a multiple of 128 lanes.  Hoisted out of the forward
    so each call pays zero param-preprocessing HBM traffic."""
    dims = [weights[0].shape[0]] + [w.shape[1] for w in weights]
    dims_pad = [_round_up(d, LANE) for d in dims]
    w_pad, b_pad = [], []
    for l, (w, b) in enumerate(zip(weights, biases)):
        di, do = dims[l], dims[l + 1]
        dip, dop = dims_pad[l], dims_pad[l + 1]
        wp = jnp.pad(jnp.asarray(w, jnp.bfloat16), ((0, dip - di), (0, dop - do)))
        bp = jnp.pad(jnp.asarray(b, jnp.float32), (0, dop - do)).reshape(1, dop)
        w_pad.append(wp)
        b_pad.append(bp)
    return PreparedDNNParams(tuple(w_pad), tuple(b_pad), tuple(dims), tuple(dims_pad))


def dnn_forward(x, params: PreparedDNNParams, *, norm=False, timesteps=None,
                guidance=None, p_uncond=None, max_tile_b=512):
    """Fused MLP forward.  `params` comes from prepare_dnn_params (weights are
    pre-transposed torch weights, i.e. (d_in, d_out)).  Returns (B, d_out_last)
    in x.dtype."""
    del timesteps, guidance, p_uncond  # unused by the reference forward
    B, D_in = x.shape
    dims, dims_pad = params.dims, params.dims_pad
    assert dims[0] == D_in, "x feature dim must match first layer input dim"
    num_layers = len(params.w_pad)
    Din_p, Dout_p = dims_pad[0], dims_pad[-1]
    D_out = dims[-1]
    out_dtype = x.dtype

    # ---- batch tiling -------------------------------------------------------
    # Multiple-of-16 tiles keep bf16 vregs fully packed / stores unmasked.
    # round_up(cdiv(B, 2), 16) yields >=2 grid steps whenever B allows, so the
    # "parallel" batch axis actually feeds both v7x TensorCores; small batches
    # collapse to a single block.  Padded rows are sliced off in the wrapper
    # (they hold bias/tanh garbage -- never reduce over batch in-kernel).
    tile_b = max(16, min(max_tile_b, _round_up(pl.cdiv(B, 2), 16)))
    grid_b = pl.cdiv(B, tile_b)
    B_pad = grid_b * tile_b

    # x stays f32 when normalizing (match torch's f32 F.normalize), otherwise
    # bf16 to halve the input DMA bytes.
    x_dtype = jnp.float32 if norm else jnp.bfloat16
    x_p = jnp.pad(x.astype(x_dtype), ((0, B_pad - B), (0, Din_p - D_in)))
    x_itemsize = jnp.dtype(x_dtype).itemsize
    out_itemsize = jnp.dtype(out_dtype).itemsize

    kernel = _make_dnn_kernel(num_layers, norm)

    flat_params = []
    for wp, bp in zip(params.w_pad, params.b_pad):
        flat_params.append(wp)
        flat_params.append(bp)

    def build_in_specs(single_buffer_params: bool):
        # Weights/biases are grid-invariant (index_map is constant), so they
        # don't need double buffering -> pl.Buffered(1) halves their VMEM.
        kw = dict(pipeline_mode=pl.Buffered(buffer_count=1)) if single_buffer_params else {}
        specs = [pl.BlockSpec((tile_b, Din_p), lambda i: (i, 0))]
        for wp, bp in zip(params.w_pad, params.b_pad):
            specs.append(pl.BlockSpec(wp.shape, lambda i: (0, 0), **kw))
            specs.append(pl.BlockSpec(bp.shape, lambda i: (0, 0), **kw))
        return specs

    out_spec = pl.BlockSpec((tile_b, Dout_p), lambda i: (i, 0))

    # ---- advisory cost estimate ---------------------------------------------
    flops = 2 * B_pad * sum(dims_pad[l] * dims_pad[l + 1] for l in range(num_layers))
    transcendentals = B_pad * sum(dims_pad[1:-1])  # one tanh per hidden unit
    param_bytes = sum(w.size * 2 + b.size * 4
                      for w, b in zip(params.w_pad, params.b_pad))
    bytes_accessed = (x_p.size * x_itemsize + B_pad * Dout_p * out_itemsize
                      + param_bytes)
    cost = pl.CostEstimate(flops=int(flops),
                           transcendentals=int(transcendentals),
                           bytes_accessed=int(bytes_accessed))

    # ---- VMEM budget ---------------------------------------------------------
    max_w = max(dims_pad)

    def vmem_limit(param_buffers: int) -> int:
        est = (2 * tile_b * Din_p * x_itemsize        # x tile, double-buffered
               + 2 * tile_b * Dout_p * out_itemsize   # out tile, double-buffered
               + param_buffers * param_bytes          # resident params
               + 4 * tile_b * max_w * 4)              # f32 activation working set
        return int(min(max(est + (8 << 20), 32 << 20), 48 << 20))

    def call(single_buffer_params: bool):
        return pl.pallas_call(
            kernel,
            out_shape=jax.ShapeDtypeStruct((B_pad, Dout_p), out_dtype),
            grid_spec=pltpu.PrefetchScalarGridSpec(
                num_scalar_prefetch=0,
                grid=(grid_b,),
                in_specs=build_in_specs(single_buffer_params),
                out_specs=out_spec,
            ),
            compiler_params=pltpu.CompilerParams(
                dimension_semantics=("parallel",),
                vmem_limit_bytes=vmem_limit(1 if single_buffer_params else 2)),
            cost_estimate=cost,
        )(x_p, *flat_params)

    try:
        out_padded = call(True)
    except Exception:
        # pl.Buffered(1) pipeline_mode unsupported on this jax build -> fall
        # back to default double-buffered param blocks (correctness identical).
        out_padded = call(False)

    return out_padded[:B, :D_out].astype(x.dtype)


def init_dnn_params(key, in_dims, out_dims):
    """Deterministic init mirroring DNN.init_weights (xavier-ish normal).
    Weights stored as (d_in, d_out) = already-transposed torch weight."""
    assert out_dims[0] == in_dims[-1], "In and out dimensions must equal."
    dims = list(in_dims) + list(out_dims[1:])  # full chain of layer widths
    weights, biases = [], []
    for d_in, d_out in zip(dims[:-1], dims[1:]):
        key, kw, kb = jax.random.split(key, 3)
        std = (2.0 / (d_in + d_out)) ** 0.5
        w = std * jax.random.normal(kw, (d_in, d_out), dtype=jnp.float32)
        b = 0.001 * jax.random.normal(kb, (d_out,), dtype=jnp.float32)
        weights.append(w)
        biases.append(b)
    return weights, biases


def dnn_reference_bf16(x, weights, biases, norm=False):
    """Plain-JAX reference mirroring the kernel's numerics (f32 normalize,
    bf16 matmuls with f32 accumulation, f32 bias/tanh)."""
    h = x.astype(jnp.float32)
    if norm:
        sumsq = jnp.sum(h * h, axis=-1, keepdims=True)
        h = h * jax.lax.rsqrt(jnp.maximum(sumsq, 1e-24))
    n = len(weights)
    for l, (w, b) in enumerate(zip(weights, biases)):
        h = jnp.dot(h.astype(jnp.bfloat16), w.astype(jnp.bfloat16),
                    preferred_element_type=jnp.float32) + b.astype(jnp.float32)
        if l != n - 1:
            h = jnp.tanh(h)
    return h.astype(x.dtype)


def dnn_reference_f32(x, weights, biases, norm=False):
    """Full-precision reference of the PyTorch forward (eval mode)."""
    h = x.astype(jnp.float32)
    if norm:
        nrm = jnp.sqrt(jnp.sum(h * h, axis=-1, keepdims=True))
        h = h / jnp.maximum(nrm, 1e-12)
    n = len(weights)
    for l, (w, b) in enumerate(zip(weights, biases)):
        h = h @ w + b
        if l != n - 1:
            h = jnp.tanh(h)
    return h.astype(x.dtype)


if __name__ == "__main__":
    key = jax.random.PRNGKey(0)

    # Small config consistent with the module:
    #   in_dims=[128, 64, 32], out_dims=[32, 64, 128] -> layer chain
    #   128 -> 64 -> 32 -> 64 -> 128 (emb_size unused by this forward).
    in_dims = [128, 64, 32]
    out_dims = [32, 64, 128]
    batch = 16

    key, kx, kp = jax.random.split(key, 3)
    x = jax.random.normal(kx, (batch, in_dims[0]), dtype=jnp.float32)
    timesteps = jnp.zeros((batch,), dtype=jnp.int32)        # unused by forward
    guidance = jnp.zeros((batch, in_dims[0]), jnp.float32)  # unused by forward
    p_uncond = 0.1                                          # unused by forward

    weights, biases = init_dnn_params(kp, in_dims, out_dims)
    prepared = prepare_dnn_params(weights, biases)  # one-time pad + bf16 cast

    # --- run 1: norm=False ---------------------------------------------------
    out = dnn_forward(x, prepared, norm=False, timesteps=timesteps,
                      guidance=guidance, p_uncond=p_uncond)
    out = jax.block_until_ready(out)
    assert out.shape == (batch, out_dims[-1])
    ref = dnn_reference_bf16(x, weights, biases, norm=False)
    ref32 = dnn_reference_f32(x, weights, biases, norm=False)
    assert jnp.allclose(out, ref, atol=2e-3, rtol=2e-3), "mismatch vs bf16 reference"
    assert float(jnp.max(jnp.abs(out - ref32))) < 0.1, "drifted from f32 reference"

    # --- run 2: norm=True, ragged batch (exercises cdiv + padding path) -----
    batch2 = 13
    x2 = jax.random.normal(key, (batch2, in_dims[0]), dtype=jnp.float32)
    out2 = dnn_forward(x2, prepared, norm=True,
                       timesteps=jnp.zeros((batch2,), jnp.int32),
                       guidance=jnp.zeros((batch2, in_dims[0]), jnp.float32),
                       p_uncond=p_uncond)
    out2 = jax.block_until_ready(out2)
    ref2 = dnn_reference_bf16(x2, weights, biases, norm=True)
    assert out2.shape == (batch2, out_dims[-1])
    assert jnp.allclose(out2, ref2, atol=2e-3, rtol=2e-3), "mismatch (norm=True)"

    # --- run 3: batch big enough to split into >=2 grid steps ----------------
    batch3 = 48
    x3 = jax.random.normal(kx, (batch3, in_dims[0]), dtype=jnp.float32)
    out3 = jax.block_until_ready(dnn_forward(x3, prepared, norm=False))
    ref3 = dnn_reference_bf16(x3, weights, biases, norm=False)
    assert out3.shape == (batch3, out_dims[-1])
    assert jnp.allclose(out3, ref3, atol=2e-3, rtol=2e-3), "mismatch (multi-tile)"

    print("KERNEL_OK")
</pallas_src>

<mosaic_0001>
module attributes {stable_mosaic.version = 11 : i64} {
  func.func @kernel(%arg0: i32, %arg1: memref<16x128xbf16, #tpu.memory_space<vmem>>, %arg2: memref<128x128xbf16, #tpu.memory_space<vmem>>, %arg3: memref<1x128xf32, #tpu.memory_space<vmem>>, %arg4: memref<128x128xbf16, #tpu.memory_space<vmem>>, %arg5: memref<1x128xf32, #tpu.memory_space<vmem>>, %arg6: memref<128x128xbf16, #tpu.memory_space<vmem>>, %arg7: memref<1x128xf32, #tpu.memory_space<vmem>>, %arg8: memref<128x128xbf16, #tpu.memory_space<vmem>>, %arg9: memref<1x128xf32, #tpu.memory_space<vmem>>, %arg10: memref<16x128xf32, #tpu.memory_space<vmem>>) attributes {dimension_semantics = [#tpu.dimension_semantics<parallel>], iteration_bounds = array<i64: 1>, scalar_prefetch = 0 : i64, scratch_operands = 0 : i64, tpu.core_type = #tpu.core_type<tc>, window_params = [{transform_indices = @transform_0, window_bounds = array<i64: 16, 128>}, {pipeline_mode = #tpu.pipeline_mode<synchronous>, transform_indices = @transform_1, window_bounds = array<i64: 128, 128>}, {pipeline_mode = #tpu.pipeline_mode<synchronous>, transform_indices = @transform_2, window_bounds = array<i64: 1, 128>}, {pipeline_mode = #tpu.pipeline_mode<synchronous>, transform_indices = @transform_3, window_bounds = array<i64: 128, 128>}, {pipeline_mode = #tpu.pipeline_mode<synchronous>, transform_indices = @transform_4, window_bounds = array<i64: 1, 128>}, {pipeline_mode = #tpu.pipeline_mode<synchronous>, transform_indices = @transform_5, window_bounds = array<i64: 128, 128>}, {pipeline_mode = #tpu.pipeline_mode<synchronous>, transform_indices = @transform_6, window_bounds = array<i64: 1, 128>}, {pipeline_mode = #tpu.pipeline_mode<synchronous>, transform_indices = @transform_7, window_bounds = array<i64: 128, 128>}, {pipeline_mode = #tpu.pipeline_mode<synchronous>, transform_indices = @transform_8, window_bounds = array<i64: 1, 128>}, {transform_indices = @transform_9, window_bounds = array<i64: 16, 128>}]} {
    %c0 = arith.constant 0 : index
    %c0_0 = arith.constant 0 : index
    %0 = vector.load %arg1[%c0, %c0_0] : memref<16x128xbf16, #tpu.memory_space<vmem>>, vector<16x128xbf16>
    %1 = arith.extf %0 : vector<16x128xbf16> to vector<16x128xf32>
    %2 = arith.truncf %1 : vector<16x128xf32> to vector<16x128xbf16>
    %c0_1 = arith.constant 0 : index
    %c0_2 = arith.constant 0 : index
    %3 = vector.load %arg2[%c0_1, %c0_2] : memref<128x128xbf16, #tpu.memory_space<vmem>>, vector<128x128xbf16>
    %c0_3 = arith.constant 0 : index
    %c0_4 = arith.constant 0 : index
    %4 = vector.load %arg3[%c0_3, %c0_4] : memref<1x128xf32, #tpu.memory_space<vmem>>, vector<1x128xf32>
    %cst = arith.constant dense<0.000000e+00> : vector<16x128xf32>
    %5 = tpu.matmul %2, %3, %cst {dimension_numbers = #tpu.dot_dimension_numbers<[1], [0], [0], [1], [0, 0, 1, 1], [], []>} : vector<16x128xbf16>, vector<128x128xbf16>, vector<16x128xf32> -> vector<16x128xf32>
    %6 = vector.broadcast %4 : vector<1x128xf32> to vector<16x128xf32>
    %7 = arith.addf %5, %6 : vector<16x128xf32>
    %8 = math.tanh %7 : vector<16x128xf32>
    %9 = arith.truncf %8 : vector<16x128xf32> to vector<16x128xbf16>
    %c0_5 = arith.constant 0 : index
    %c0_6 = arith.constant 0 : index
    %10 = vector.load %arg4[%c0_5, %c0_6] : memref<128x128xbf16, #tpu.memory_space<vmem>>, vector<128x128xbf16>
    %c0_7 = arith.constant 0 : index
    %c0_8 = arith.constant 0 : index
    %11 = vector.load %arg5[%c0_7, %c0_8] : memref<1x128xf32, #tpu.memory_space<vmem>>, vector<1x128xf32>
    %cst_9 = arith.constant dense<0.000000e+00> : vector<16x128xf32>
    %12 = tpu.matmul %9, %10, %cst_9 {dimension_numbers = #tpu.dot_dimension_numbers<[1], [0], [0], [1], [0, 0, 1, 1], [], []>} : vector<16x128xbf16>, vector<128x128xbf16>, vector<16x128xf32> -> vector<16x128xf32>
    %13 = vector.broadcast %11 : vector<1x128xf32> to vector<16x128xf32>
    %14 = arith.addf %12, %13 : vector<16x128xf32>
    %15 = math.tanh %14 : vector<16x128xf32>
    %16 = arith.truncf %15 : vector<16x128xf32> to vector<16x128xbf16>
    %c0_10 = arith.constant 0 : index
    %c0_11 = arith.constant 0 : index
    %17 = vector.load %arg6[%c0_10, %c0_11] : memref<128x128xbf16, #tpu.memory_space<vmem>>, vector<128x128xbf16>
    %c0_12 = arith.constant 0 : index
    %c0_13 = arith.constant 0 : index
    %18 = vector.load %arg7[%c0_12, %c0_13] : memref<1x128xf32, #tpu.memory_space<vmem>>, vector<1x128xf32>
    %cst_14 = arith.constant dense<0.000000e+00> : vector<16x128xf32>
    %19 = tpu.matmul %16, %17, %cst_14 {dimension_numbers = #tpu.dot_dimension_numbers<[1], [0], [0], [1], [0, 0, 1, 1], [], []>} : vector<16x128xbf16>, vector<128x128xbf16>, vector<16x128xf32> -> vector<16x128xf32>
    %20 = vector.broadcast %18 : vector<1x128xf32> to vector<16x128xf32>
    %21 = arith.addf %19, %20 : vector<16x128xf32>
    %22 = math.tanh %21 : vector<16x128xf32>
    %23 = arith.truncf %22 : vector<16x128xf32> to vector<16x128xbf16>
    %c0_15 = arith.constant 0 : index
    %c0_16 = arith.constant 0 : index
    %24 = vector.load %arg8[%c0_15, %c0_16] : memref<128x128xbf16, #tpu.memory_space<vmem>>, vector<128x128xbf16>
    %c0_17 = arith.constant 0 : index
    %c0_18 = arith.constant 0 : index
    %25 = vector.load %arg9[%c0_17, %c0_18] : memref<1x128xf32, #tpu.memory_space<vmem>>, vector<1x128xf32>
    %cst_19 = arith.constant dense<0.000000e+00> : vector<16x128xf32>
    %26 = tpu.matmul %23, %24, %cst_19 {dimension_numbers = #tpu.dot_dimension_numbers<[1], [0], [0], [1], [0, 0, 1, 1], [], []>} : vector<16x128xbf16>, vector<128x128xbf16>, vector<16x128xf32> -> vector<16x128xf32>
    %27 = vector.broadcast %25 : vector<1x128xf32> to vector<16x128xf32>
    %28 = arith.addf %26, %27 : vector<16x128xf32>
    %c0_20 = arith.constant 0 : index
    %c0_21 = arith.constant 0 : index
    %29 = vector.load %arg10[%c0_20, %c0_21] : memref<16x128xf32, #tpu.memory_space<vmem>>, vector<16x128xf32>
    tpu.vector_store %arg10[%c0_20, %c0_21], %28 {strides = array<i32>} : memref<16x128xf32, #tpu.memory_space<vmem>>, vector<16x128xf32>,
    return
  }
  func.func @transform_0(%arg0: i32) -> (i32, i32) {
    %c0_i32 = arith.constant 0 : i32
    %c0_i32_0 = arith.constant 0 : i32
    return %arg0, %c0_i32 : i32, i32
  }
  func.func @transform_1(%arg0: i32) -> (i32, i32) {
    %c0_i32 = arith.constant 0 : i32
    %c0_i32_0 = arith.constant 0 : i32
    %c0_i32_1 = arith.constant 0 : i32
    return %c0_i32, %c0_i32_0 : i32, i32
  }
  func.func @transform_2(%arg0: i32) -> (i32, i32) {
    %c0_i32 = arith.constant 0 : i32
    %c0_i32_0 = arith.constant 0 : i32
    %c0_i32_1 = arith.constant 0 : i32
    return %c0_i32, %c0_i32_0 : i32, i32
  }
  func.func @transform_3(%arg0: i32) -> (i32, i32) {
    %c0_i32 = arith.constant 0 : i32
    %c0_i32_0 = arith.constant 0 : i32
    %c0_i32_1 = arith.constant 0 : i32
    return %c0_i32, %c0_i32_0 : i32, i32
  }
  func.func @transform_4(%arg0: i32) -> (i32, i32) {
    %c0_i32 = arith.constant 0 : i32
    %c0_i32_0 = arith.constant 0 : i32
    %c0_i32_1 = arith.constant 0 : i32
    return %c0_i32, %c0_i32_0 : i32, i32
  }
  func.func @transform_5(%arg0: i32) -> (i32, i32) {
    %c0_i32 = arith.constant 0 : i32
    %c0_i32_0 = arith.constant 0 : i32
    %c0_i32_1 = arith.constant 0 : i32
    return %c0_i32, %c0_i32_0 : i32, i32
  }
  func.func @transform_6(%arg0: i32) -> (i32, i32) {
    %c0_i32 = arith.constant 0 : i32
    %c0_i32_0 = arith.constant 0 : i32
    %c0_i32_1 = arith.constant 0 : i32
    return %c0_i32, %c0_i32_0 : i32, i32
  }
  func.func @transform_7(%arg0: i32) -> (i32, i32) {
    %c0_i32 = arith.constant 0 : i32
    %c0_i32_0 = arith.constant 0 : i32
    %c0_i32_1 = arith.constant 0 : i32
    return %c0_i32, %c0_i32_0 : i32, i32
  }
  func.func @transform_8(%arg0: i32) -> (i32, i32) {
    %c0_i32 = arith.constant 0 : i32
    %c0_i32_0 = arith.constant 0 : i32
    %c0_i32_1 = arith.constant 0 : i32
    return %c0_i32, %c0_i32_0 : i32, i32
  }
  func.func @transform_9(%arg0: i32) -> (i32, i32) {
    %c0_i32 = arith.constant 0 : i32
    %c0_i32_0 = arith.constant 0 : i32
    return %arg0, %c0_i32 : i32, i32
  }
}

module attributes {stable_mosaic.version = 11 : i64} {
  func.func @kernel(%arg0: i32, %arg1: memref<16x128xbf16, #tpu.memory_space<vmem>>, %arg2: memref<128x128xbf16, #tpu.memory_space<vmem>>, %arg3: memref<1x128xf32, #tpu.memory_space<vmem>>, %arg4: memref<128x128xbf16, #tpu.memory_space<vmem>>, %arg5: memref<1x128xf32, #tpu.memory_space<vmem>>, %arg6: memref<128x128xbf16, #tpu.memory_space<vmem>>, %arg7: memref<1x128xf32, #tpu.memory_space<vmem>>, %arg8: memref<128x128xbf16, #tpu.memory_space<vmem>>, %arg9: memref<1x128xf32, #tpu.memory_space<vmem>>, %arg10: memref<16x128xf32, #tpu.memory_space<vmem>>) attributes {dimension_semantics = [#tpu.dimension_semantics<parallel>], iteration_bounds = array<i64: 1>, scalar_prefetch = 0 : i64, scratch_operands = 0 : i64, tpu.core_type = #tpu.core_type<tc>, window_params = [{transform_indices = @transform_0, window_bounds = array<i64: 16, 128>}, {pipeline_mode = #tpu.pipeline_mode<synchronous>, transform_indices = @transform_1, window_bounds = array<i64: 128, 128>}, {pipeline_mode = #tpu.pipeline_mode<synchronous>, transform_indices = @transform_2, window_bounds = array<i64: 1, 128>}, {pipeline_mode = #tpu.pipeline_mode<synchronous>, transform_indices = @transform_3, window_bounds = array<i64: 128, 128>}, {pipeline_mode = #tpu.pipeline_mode<synchronous>, transform_indices = @transform_4, window_bounds = array<i64: 1, 128>}, {pipeline_mode = #tpu.pipeline_mode<synchronous>, transform_indices = @transform_5, window_bounds = array<i64: 128, 128>}, {pipeline_mode = #tpu.pipeline_mode<synchronous>, transform_indices = @transform_6, window_bounds = array<i64: 1, 128>}, {pipeline_mode = #tpu.pipeline_mode<synchronous>, transform_indices = @transform_7, window_bounds = array<i64: 128, 128>}, {pipeline_mode = #tpu.pipeline_mode<synchronous>, transform_indices = @transform_8, window_bounds = array<i64: 1, 128>}, {transform_indices = @transform_9, window_bounds = array<i64: 16, 128>}]} {
    %c0 = arith.constant 0 : index
    %c0_0 = arith.constant 0 : index
    %0 = vector.load %arg1[%c0, %c0_0] : memref<16x128xbf16, #tpu.memory_space<vmem>>, vector<16x128xbf16>
    %1 = arith.extf %0 : vector<16x128xbf16> to vector<16x128xf32>
    %2 = arith.truncf %1 : vector<16x128xf32> to vector<16x128xbf16>
    %c0_1 = arith.constant 0 : index
    %c0_2 = arith.constant 0 : index
    %3 = vector.load %arg2[%c0_1, %c0_2] : memref<128x128xbf16, #tpu.memory_space<vmem>>, vector<128x128xbf16>
    %c0_3 = arith.constant 0 : index
    %c0_4 = arith.constant 0 : index
    %4 = vector.load %arg3[%c0_3, %c0_4] : memref<1x128xf32, #tpu.memory_space<vmem>>, vector<1x128xf32>
    %cst = arith.constant dense<0.000000e+00> : vector<16x128xf32>
    %5 = tpu.matmul %2, %3, %cst {dimension_numbers = #tpu.dot_dimension_numbers<[1], [0], [0], [1], [0, 0, 1, 1], [], []>} : vector<16x128xbf16>, vector<128x128xbf16>, vector<16x128xf32> -> vector<16x128xf32>
    %6 = vector.broadcast %4 : vector<1x128xf32> to vector<16x128xf32>
    %7 = arith.addf %5, %6 : vector<16x128xf32>
    %8 = math.tanh %7 : vector<16x128xf32>
    %9 = arith.truncf %8 : vector<16x128xf32> to vector<16x128xbf16>
    %c0_5 = arith.constant 0 : index
    %c0_6 = arith.constant 0 : index
    %10 = vector.load %arg4[%c0_5, %c0_6] : memref<128x128xbf16, #tpu.memory_space<vmem>>, vector<128x128xbf16>
    %c0_7 = arith.constant 0 : index
    %c0_8 = arith.constant 0 : index
    %11 = vector.load %arg5[%c0_7, %c0_8] : memref<1x128xf32, #tpu.memory_space<vmem>>, vector<1x128xf32>
    %cst_9 = arith.constant dense<0.000000e+00> : vector<16x128xf32>
    %12 = tpu.matmul %9, %10, %cst_9 {dimension_numbers = #tpu.dot_dimension_numbers<[1], [0], [0], [1], [0, 0, 1, 1], [], []>} : vector<16x128xbf16>, vector<128x128xbf16>, vector<16x128xf32> -> vector<16x128xf32>
    %13 = vector.broadcast %11 : vector<1x128xf32> to vector<16x128xf32>
    %14 = arith.addf %12, %13 : vector<16x128xf32>
    %15 = math.tanh %14 : vector<16x128xf32>
    %16 = arith.truncf %15 : vector<16x128xf32> to vector<16x128xbf16>
    %c0_10 = arith.constant 0 : index
    %c0_11 = arith.constant 0 : index
    %17 = vector.load %arg6[%c0_10, %c0_11] : memref<128x128xbf16, #tpu.memory_space<vmem>>, vector<128x128xbf16>
    %c0_12 = arith.constant 0 : index
    %c0_13 = arith.constant 0 : index
    %18 = vector.load %arg7[%c0_12, %c0_13] : memref<1x128xf32, #tpu.memory_space<vmem>>, vector<1x128xf32>
    %cst_14 = arith.constant dense<0.000000e+00> : vector<16x128xf32>
    %19 = tpu.matmul %16, %17, %cst_14 {dimension_numbers = #tpu.dot_dimension_numbers<[1], [0], [0], [1], [0, 0, 1, 1], [], []>} : vector<16x128xbf16>, vector<128x128xbf16>, vector<16x128xf32> -> vector<16x128xf32>
    %20 = vector.broadcast %18 : vector<1x128xf32> to vector<16x128xf32>
    %21 = arith.addf %19, %20 : vector<16x128xf32>
    %22 = math.tanh %21 : vector<16x128xf32>
    %23 = arith.truncf %22 : vector<16x128xf32> to vector<16x128xbf16>
    %c0_15 = arith.constant 0 : index
    %c0_16 = arith.constant 0 : index
    %24 = vector.load %arg8[%c0_15, %c0_16] : memref<128x128xbf16, #tpu.memory_space<vmem>>, vector<128x128xbf16>
    %c0_17 = arith.constant 0 : index
    %c0_18 = arith.constant 0 : index
    %25 = vector.load %arg9[%c0_17, %c0_18] : memref<1x128xf32, #tpu.memory_space<vmem>>, vector<1x128xf32>
    %cst_19 = arith.constant dense<0.000000e+00> : vector<16x128xf32>
    %26 = tpu.matmul %23, %24, %cst_19 {dimension_numbers = #tpu.dot_dimension_numbers<[1], [0], [0], [1], [0, 0, 1, 1], [], []>} : vector<16x128xbf16>, vector<128x128xbf16>, vector<16x128xf32> -> vector<16x128xf32>
    %27 = vector.broadcast %25 : vector<1x128xf32> to vector<16x128xf32>
    %28 = arith.addf %26, %27 : vector<16x128xf32>
    %c0_20 = arith.constant 0 : index
    %c0_21 = arith.constant 0 : index
    %29 = vector.load %arg10[%c0_20, %c0_21] : memref<16x128xf32, #tpu.memory_space<vmem>>, vector<16x128xf32>
    tpu.vector_store %arg10[%c0_20, %c0_21], %28 {strides = array<i32>} : memref<16x128xf32, #tpu.memory_space<vmem>>, vector<16x128xf32>,
    return
  }
  func.func @transform_0(%arg0: i32) -> (i32, i32) {
    %c0_i32 = arith.constant 0 : i32
    %c0_i32_0 = arith.constant 0 : i32
    return %arg0, %c0_i32 : i32, i32
  }
  func.func @transform_1(%arg0: i32) -> (i32, i32) {
    %c0_i32 = arith.constant 0 : i32
    %c0_i32_0 = arith.constant 0 : i32
    %c0_i32_1 = arith.constant 0 : i32
    return %c0_i32, %c0_i32_0 : i32, i32
  }
  func.func @transform_2(%arg0: i32) -> (i32, i32) {
    %c0_i32 = arith.constant 0 : i32
    %c0_i32_0 = arith.constant 0 : i32
    %c0_i32_1 = arith.constant 0 : i32
    return %c0_i32, %c0_i32_0 : i32, i32
  }
  func.func @transform_3(%arg0: i32) -> (i32, i32) {
    %c0_i32 = arith.constant 0 : i32
    %c0_i32_0 = arith.constant 0 : i32
    %c0_i32_1 = arith.constant 0 : i32
    return %c0_i32, %c0_i32_0 : i32, i32
  }
  func.func @transform_4(%arg0: i32) -> (i32, i32) {
    %c0_i32 = arith.constant 0 : i32
    %c0_i32_0 = arith.constant 0 : i32
    %c0_i32_1 = arith.constant 0 : i32
    return %c0_i32, %c0_i32_0 : i32, i32
  }
  func.func @transform_5(%arg0: i32) -> (i32, i32) {
    %c0_i32 = arith.constant 0 : i32
    %c0_i32_0 = arith.constant 0 : i32
    %c0_i32_1 = arith.constant 0 : i32
    return %c0_i32, %c0_i32_0 : i32, i32
  }
  func.func @transform_6(%arg0: i32) -> (i32, i32) {
    %c0_i32 = arith.constant 0 : i32
    %c0_i32_0 = arith.constant 0 : i32
    %c0_i32_1 = arith.constant 0 : i32
    return %c0_i32, %c0_i32_0 : i32, i32
  }
  func.func @transform_7(%arg0: i32) -> (i32, i32) {
    %c0_i32 = arith.constant 0 : i32
    %c0_i32_0 = arith.constant 0 : i32
    %c0_i32_1 = arith.constant 0 : i32
    return %c0_i32, %c0_i32_0 : i32, i32
  }
  func.func @transform_8(%arg0: i32) -> (i32, i32) {
    %c0_i32 = arith.constant 0 : i32
    %c0_i32_0 = arith.constant 0 : i32
    %c0_i32_1 = arith.constant 0 : i32
    return %c0_i32, %c0_i32_0 : i32, i32
  }
  func.func @transform_9(%arg0: i32) -> (i32, i32) {
    %c0_i32 = arith.constant 0 : i32
    %c0_i32_0 = arith.constant 0 : i32
    return %arg0, %c0_i32 : i32, i32
  }
}

</mosaic_0001>

<bundles_post_ra>
// kernel: tpu_custom_call.1
= control target key start
LH: loop header
LB: loop body
LE: loop exit
PB: predicated region body
PF: predicated region fallthrough
CT: control target
= control target key end

     0   :  { %14 = vsyncpa [#allocation3], 0  ;;  %s912_s0 = inlined_call_operand.hbm [shape: bf16[16,128], index: 0, kind: input, shape index: {}]   ;;  %s913_s1 = inlined_call_operand.hbm [shape: bf16[128,128], index: 1, kind: input, shape index: {}]   ;;  %s914_s2 = inlined_call_operand.vmem [shape: f32[1,128], index: 2, kind: input, shape index: {}]   ;;  %s915_s3 = inlined_call_operand.hbm [shape: bf16[128,128], index: 3, kind: input, shape index: {}]   ;;  %s916_s4 = inlined_call_operand.vmem [shape: f32[1,128], index: 4, kind: input, shape index: {}]   ;;  %s917_s5 = inlined_call_operand.hbm [shape: bf16[128,128], index: 5, kind: input, shape index: {}]   ;;  %s918_s6 = inlined_call_operand.vmem [shape: f32[1,128], index: 6, kind: input, shape index: {}]   ;;  %s919_s7 = inlined_call_operand.hbm [shape: bf16[128,128], index: 7, kind: input, shape index: {}]   ;;  %s920_s8 = inlined_call_operand.vmem [shape: f32[1,128], index: 8, kind: input, shape index: {}]   ;;  %s921_s9 = inlined_call_operand.hbm [shape: f32[16,128], index: 9, kind: output, shape index: {}]  }
   0x1   :  { %15 = vsyncpa [#allocation6], 0 }
   0x2   :  { %16 = vsyncpa [#allocation9], 0 }
   0x3   :  { %17 = vsyncpa [#allocation4], 0  ;;  %s35_s11 = sshll.u32 %s913_s1, 4  ;;  %s822_s12 = smov [#allocation5]   ;;  %s36_s11 = int_to_ptr.hbm [resolvable:$true] %s35_s11 }
   0x4   :  { %s37_s13 = sshll.u32 %s822_s12, 4  ;;  %s65_s16 = sshll.u32 %s917_s5, 4  ;;  %s38_s13 = int_to_ptr.vmem [resolvable:$true] %s37_s13  ;;  %s66_s16 = int_to_ptr.hbm [resolvable:$true] %s65_s16 }
   0x5   :  { %s823_s17 = smov 64   ;;  %s824_s18 = smov 4  }
   0x6   :  { %43 = dma.hbm_to_vmem [thread:$0]  %s36_s11, 1024, %s38_s13, [#allocation6], %s823_s17, %s823_s17, %s824_s18  }
   0x7   :  { %s825_s19 = smov [#allocation8]   ;;  %s22_s23 = sshll.u32 %s912_s0, 4  ;;  %s23_s23 = int_to_ptr.hbm [resolvable:$true] %s22_s23 }
   0x8   :  { %s67_s20 = sshll.u32 %s825_s19, 4  ;;  %s50_s25 = sshll.u32 %s915_s3, 4  ;;  %s68_s20 = int_to_ptr.vmem [resolvable:$true] %s67_s20  ;;  %s51_s25 = int_to_ptr.hbm [resolvable:$true] %s50_s25 }
   0x9   :  { %73 = dma.hbm_to_vmem [thread:$0]  %s66_s16, 1024, %s68_s20, [#allocation9], %s823_s17, %s823_s17, %s824_s18  }
   0xa   :  { %s826_s26 = smov [#allocation2]   ;;  %s827_s5 = smov [#allocation7]  }
   0xb   :  { %s24_s27 = sshll.u32 %s826_s26, 4  ;;  %s52_s28 = sshll.u32 %s827_s5, 4  ;;  %s25_s27 = int_to_ptr.vmem [resolvable:$true] %s24_s27  ;;  %s53_s28 = int_to_ptr.vmem [resolvable:$true] %s52_s28 }
   0xc   :  { %30 = dma.hbm_to_vmem [thread:$0]  %s23_s23, 128, %s25_s27, [#allocation3], %s823_s17, %s823_s17, %s824_s18  }
   0xd   :  { %s80_s10 = sshll.u32 %s919_s7, 4  ;;  %s828_s0 = smov [#allocation10]   ;;  %s81_s10 = int_to_ptr.hbm [resolvable:$true] %s80_s10 }
   0xe   :  { %58 = dma.hbm_to_vmem [thread:$0]  %s51_s25, 1024, %s53_s28, [#allocation6], %s823_s17, %s823_s17, %s824_s18  }
   0xf   :  { %s82_s11 = sshll.u32 %s828_s0, 4  ;;  %s83_s11 = int_to_ptr.vmem [resolvable:$true] %s82_s11 }
  0x10   :  { %88 = dma.hbm_to_vmem [thread:$0]  %s81_s10, 1024, %s83_s11, [#allocation9], %s823_s17, %s823_s17, %s824_s18  }
  0x11   :  { %814 = dma.done.wait [#allocation3], 128  }
  0x12   :  { %815 = vsyncadd [#allocation3], 4294967168 }
  0x13   :  { %816 = dma.done.wait [#allocation6], 2048  }
  0x14   :  { %817 = vsyncadd [#allocation6], 4294965248 }
  0x15   :  { %818 = dma.done.wait [#allocation9], 2048  }
  0x16   :  { %819 = vsyncadd [#allocation9], 4294965248  ;;  %v619_v0 = vld [vmem:[#allocation5 + $0x38] sm:$0xff]  ;;  %v618_v1 = vld [vmem:[#allocation5 + $0x30] sm:$0xff]  ;;  %s829_s16 = smov [#allocation11]   ;;  %s464_s19 = sshll.u32 %s921_s9, 4  ;;  %s465_s19 = int_to_ptr.hbm [resolvable:$true] %s464_s19 }
  0x17   :  { %187 = vmatpush.bf16.msra.mxu0 %v619_v0  ;;  %v627_v2 = vld [vmem:[#allocation7 + $0x38] sm:$0xff]  ;;  %v626_v3 = vld [vmem:[#allocation7 + $0x30] sm:$0xff]  ;;  %v617_v4 = vld [vmem:[#allocation5 + $0x28] sm:$0xff]  ;;  %s462_s17 = sshll.u32 %s829_s16, 4  ;;  %s830_s20 = smov 128   ;;  %s463_s17 = int_to_ptr.vmem [resolvable:$true] %s462_s17 }
  0x18   :  { %272 = vmatpush.bf16.msra.mxu1 %v627_v2  ;;  %v625_v5 = vld [vmem:[#allocation7 + $0x28] sm:$0xff]  ;;  %v616_v6 = vld [vmem:[#allocation5 + $0x20] sm:$0xff]  ;;  %v615_v7 = vld [vmem:[#allocation5 + $0x18] sm:$0xff]  ;;  %s831_s21 = smov 8  }
  0x19   :  { %v614_v8 = vld [vmem:[#allocation5 + $0x10] sm:$0xff]  ;;  %v613_v9 = vld [vmem:[#allocation5 + $0x8] sm:$0xff]  ;;  %v612_v10 = vld [vmem:[#allocation5] sm:$0xff] }
  0x1a   :  { %v611_v11 = vld [vmem:[#allocation2] sm:$0xff]  ;;  %v624_v12 = vld [vmem:[#allocation7 + $0x20] sm:$0xff]  ;;  %v622_v14 = vld [vmem:[#allocation7 + $0x10] sm:$0xff] }
  0x1b   :  { %188 = vmatpush.bf16.msra.mxu0 %v618_v1  ;;  %v623_v13 = vld [vmem:[#allocation7 + $0x18] sm:$0xff]  ;;  %v621_v15 = vld [vmem:[#allocation7 + $0x8] sm:$0xff]  ;;  %v620_v16 = vld [vmem:[#allocation7] sm:$0xff] }
  0x1c   :  { %273 = vmatpush.bf16.msra.mxu1 %v626_v3  ;;  %v635_v17 = vld [vmem:[#allocation8 + $0x38] sm:$0xff]  ;;  %v634_v18 = vld [vmem:[#allocation8 + $0x30] sm:$0xff]  ;;  %v633_v19 = vld [vmem:[#allocation8 + $0x28] sm:$0xff] }
  0x1d   :  { %357 = vmatpush.bf16.msra.mxu2 %v635_v17  ;;  %v654_v21 = vld [vmem:[%s914_s2] ss:$0 sm:$0xff]  ;;  %v632_v28 = vld [vmem:[#allocation8 + $0x20] sm:$0xff]  ;;  %v630_v30 = vld [vmem:[#allocation8 + $0x10] sm:$0xff] }
  0x1e   :  { %v631_v29 = vld [vmem:[#allocation8 + $0x18] sm:$0xff]  ;;  %v629_v31 = vld [vmem:[#allocation8 + $0x8] sm:$0xff]  ;;  %v628_v32 = vld [vmem:[#allocation8] sm:$0xff] }
  0x1f   :  { %189 = vmatpush.bf16.msra.mxu0 %v617_v4  ;;  %v643_v33 = vld [vmem:[#allocation10 + $0x38] sm:$0xff]  ;;  %v642_v34 = vld [vmem:[#allocation10 + $0x30] sm:$0xff]  ;;  %v641_v35 = vld [vmem:[#allocation10 + $0x28] sm:$0xff] }
  0x20   :  { %274 = vmatpush.bf16.msra.mxu1 %v625_v5  ;;  %442 = vmatpush.bf16.msra.mxu3 %v643_v33  ;;  %v655_v37 = vld [vmem:[%s916_s4] ss:$0 sm:$0xff]  ;;  %v640_v44 = vld [vmem:[#allocation10 + $0x20] sm:$0xff]  ;;  %v638_v46 = vld [vmem:[#allocation10 + $0x10] sm:$0xff] }
  0x21   :  { %358 = vmatpush.bf16.msra.mxu2 %v634_v18  ;;  %v639_v45 = vld [vmem:[#allocation10 + $0x18] sm:$0xff]  ;;  %v637_v47 = vld [vmem:[#allocation10 + $0x8] sm:$0xff]  ;;  %v636_v48 = vld [vmem:[#allocation10] sm:$0xff] }
  0x22   :  { %v656_v50 = vld [vmem:[%s918_s6] ss:$0 sm:$0xff] }
  0x23   :  { %190 = vmatpush.bf16.msra.mxu0 %v616_v6  ;;  %v657_v57 = vld [vmem:[%s920_s8] ss:$0 sm:$0xff] }
  0x24   :  { %275 = vmatpush.bf16.msra.mxu1 %v624_v12  ;;  %443 = vmatpush.bf16.msra.mxu3 %v642_v34 }
  0x25   :  { %359 = vmatpush.bf16.msra.mxu2 %v633_v19 }
  0x27   :  { %191 = vmatpush.bf16.msra.mxu0 %v615_v7 }
  0x28   :  { %276 = vmatpush.bf16.msra.mxu1 %v623_v13  ;;  %444 = vmatpush.bf16.msra.mxu3 %v641_v35 }
  0x29   :  { %360 = vmatpush.bf16.msra.mxu2 %v632_v28 }
  0x2b   :  { %192 = vmatpush.bf16.msra.mxu0 %v614_v8 }
  0x2c   :  { %277 = vmatpush.bf16.msra.mxu1 %v622_v14  ;;  %445 = vmatpush.bf16.msra.mxu3 %v640_v44 }
  0x2d   :  { %361 = vmatpush.bf16.msra.mxu2 %v631_v29 }
  0x2f   :  { %193 = vmatpush.bf16.msra.mxu0 %v613_v9 }
  0x30   :  { %278 = vmatpush.bf16.msra.mxu1 %v621_v15  ;;  %446 = vmatpush.bf16.msra.mxu3 %v639_v45 }
  0x31   :  { %362 = vmatpush.bf16.msra.mxu2 %v630_v30 }
  0x33   :  { %194 = vmatpush.bf16.msra.mxu0 %v612_v10 }
  0x34   :  { %279 = vmatpush.bf16.msra.mxu1 %v620_v16  ;;  %447 = vmatpush.bf16.msra.mxu3 %v638_v46 }
  0x35   :  { %363 = vmatpush.bf16.msra.mxu2 %v629_v31 }
  0x36   :  { %195 = vmatmul.bf16.vlgmr.msra.gmra.mxu0 %v611_v11 }
  0x38   :  { %448 = vmatpush.bf16.msra.mxu3 %v637_v47 }
  0x39   :  { %364 = vmatpush.bf16.msra.mxu2 %v628_v32 }
  0x3c   :  { %449 = vmatpush.bf16.msra.mxu3 %v636_v48 }
  0xb3   :  { %v196_v20 = vpop.f32.mrf.mxu0 }
  0xb4   :  { %v197_v22 = vadd.f32 %v654_v21, %v196_v20 }
  0xb6   :  { %658 = vtanh.f32 %v197_v22 }
  0xbb   :  { %v198_v23 = vpop.f32.mrf.mxu0 }
  0xbc   :  { %v199_v24 = vadd.f32 %v654_v21, %v198_v23  ;;  %v659_v25 = vpop.eup %658 }
  0xbe   :  { %660 = vtanh.f32 %v199_v24 }
  0xc4   :  { %v661_v26 = vpop.eup %660 }
  0xc5   :  { %v203_v27 = vpack.c.bf16 %v661_v26, %v659_v25 }
  0xc7   :  { %280 = vmatmul.bf16.vlgmr.msra.gmra.mxu1 %v203_v27 }
 0x144   :  { %v281_v36 = vpop.f32.mrf.mxu1 }
 0x145   :  { %v282_v38 = vadd.f32 %v655_v37, %v281_v36 }
 0x147   :  { %662 = vtanh.f32 %v282_v38 }
 0x14c   :  { %v283_v39 = vpop.f32.mrf.mxu1 }
 0x14d   :  { %v284_v40 = vadd.f32 %v655_v37, %v283_v39  ;;  %v663_v41 = vpop.eup %662 }
 0x14f   :  { %664 = vtanh.f32 %v284_v40 }
 0x155   :  { %v665_v42 = vpop.eup %664 }
 0x156   :  { %v288_v43 = vpack.c.bf16 %v665_v42, %v663_v41 }
 0x158   :  { %365 = vmatmul.bf16.vlgmr.msra.gmra.mxu2 %v288_v43 }
 0x1db   :  { %v366_v49 = vpop.f32.mrf.mxu2 }
 0x1dc   :  { %v367_v51 = vadd.f32 %v656_v50, %v366_v49 }
 0x1de   :  { %666 = vtanh.f32 %v367_v51 }
 0x1e3   :  { %v368_v52 = vpop.f32.mrf.mxu2 }
 0x1e4   :  { %v369_v53 = vadd.f32 %v656_v50, %v368_v52  ;;  %v667_v54 = vpop.eup %666 }
 0x1e6   :  { %668 = vtanh.f32 %v369_v53 }
 0x1ec   :  { %v669_v55 = vpop.eup %668 }
 0x1ed   :  { %v373_v56 = vpack.c.bf16 %v669_v55, %v667_v54 }
 0x1ef   :  { %450 = vmatmul.bf16.vlgmr.msra.gmra.mxu3 %v373_v56 }
 0x272   :  { %v451_v58 = vpop.f32.mrf.mxu3 }
 0x273   :  { %v452_v59 = vadd.f32 %v657_v57, %v451_v58 }
 0x275   :  { %456 = vst [vmem:[#allocation11] sm:$0xff] %v452_v59 }
 0x27a   :  { %v453_v60 = vpop.f32.mrf.mxu3 }
 0x27b   :  { %v454_v61 = vadd.f32 %v657_v57, %v453_v60 }
 0x27d   :  { %457 = vst [vmem:[#allocation11 + $0x8] sm:$0xff] %v454_v61 }
 0x27e   :  { %470 = dma.vmem_to_hbm [thread:$0]  %s463_s17, 256, %s465_s19, [#allocation4], %s830_s20, %s830_s20, %s831_s21  }
 0x27f   :  { %820 = dma.done.wait [#allocation4], 256  }
 0x280   :  { %821 = vsyncadd [#allocation4], 4294967040 }
 0x281   :  { %475 = vsyncpa [#allocation3], 1 }
 0x282   :  { %476 = vsyncpa [#allocation6], 1 }
 0x283   :  { %477 = vsyncpa [#allocation9], 1 }
 0x284   :  { %478 = vsyncpa [#allocation4], 1 }

// kernel: tpu_custom_call.1
= control target key start
LH: loop header
LB: loop body
LE: loop exit
PB: predicated region body
PF: predicated region fallthrough
CT: control target
= control target key end

     0   :  { %14 = vsyncpa [#allocation3], 0  ;;  %s912_s0 = inlined_call_operand.hbm [shape: bf16[16,128], index: 0, kind: input, shape index: {}]   ;;  %s913_s1 = inlined_call_operand.hbm [shape: bf16[128,128], index: 1, kind: input, shape index: {}]   ;;  %s914_s2 = inlined_call_operand.vmem [shape: f32[1,128], index: 2, kind: input, shape index: {}]   ;;  %s915_s3 = inlined_call_operand.hbm [shape: bf16[128,128], index: 3, kind: input, shape index: {}]   ;;  %s916_s4 = inlined_call_operand.vmem [shape: f32[1,128], index: 4, kind: input, shape index: {}]   ;;  %s917_s5 = inlined_call_operand.hbm [shape: bf16[128,128], index: 5, kind: input, shape index: {}]   ;;  %s918_s6 = inlined_call_operand.vmem [shape: f32[1,128], index: 6, kind: input, shape index: {}]   ;;  %s919_s7 = inlined_call_operand.hbm [shape: bf16[128,128], index: 7, kind: input, shape index: {}]   ;;  %s920_s8 = inlined_call_operand.vmem [shape: f32[1,128], index: 8, kind: input, shape index: {}]   ;;  %s921_s9 = inlined_call_operand.hbm [shape: f32[16,128], index: 9, kind: output, shape index: {}]  }
   0x1   :  { %15 = vsyncpa [#allocation6], 0 }
   0x2   :  { %16 = vsyncpa [#allocation9], 0 }
   0x3   :  { %17 = vsyncpa [#allocation4], 0  ;;  %s35_s11 = sshll.u32 %s913_s1, 4  ;;  %s822_s12 = smov [#allocation5]   ;;  %s36_s11 = int_to_ptr.hbm [resolvable:$true] %s35_s11 }
   0x4   :  { %s37_s13 = sshll.u32 %s822_s12, 4  ;;  %s65_s16 = sshll.u32 %s917_s5, 4  ;;  %s38_s13 = int_to_ptr.vmem [resolvable:$true] %s37_s13  ;;  %s66_s16 = int_to_ptr.hbm [resolvable:$true] %s65_s16 }
   0x5   :  { %s823_s17 = smov 64   ;;  %s824_s18 = smov 4  }
   0x6   :  { %43 = dma.hbm_to_vmem [thread:$0]  %s36_s11, 1024, %s38_s13, [#allocation6], %s823_s17, %s823_s17, %s824_s18  }
   0x7   :  { %s825_s19 = smov [#allocation8]   ;;  %s22_s23 = sshll.u32 %s912_s0, 4  ;;  %s23_s23 = int_to_ptr.hbm [resolvable:$true] %s22_s23 }
   0x8   :  { %s67_s20 = sshll.u32 %s825_s19, 4  ;;  %s50_s25 = sshll.u32 %s915_s3, 4  ;;  %s68_s20 = int_to_ptr.vmem [resolvable:$true] %s67_s20  ;;  %s51_s25 = int_to_ptr.hbm [resolvable:$true] %s50_s25 }
   0x9   :  { %73 = dma.hbm_to_vmem [thread:$0]  %s66_s16, 1024, %s68_s20, [#allocation9], %s823_s17, %s823_s17, %s824_s18  }
   0xa   :  { %s826_s26 = smov [#allocation2]   ;;  %s827_s5 = smov [#allocation7]  }
   0xb   :  { %s24_s27 = sshll.u32 %s826_s26, 4  ;;  %s52_s28 = sshll.u32 %s827_s5, 4  ;;  %s25_s27 = int_to_ptr.vmem [resolvable:$true] %s24_s27  ;;  %s53_s28 = int_to_ptr.vmem [resolvable:$true] %s52_s28 }
   0xc   :  { %30 = dma.hbm_to_vmem [thread:$0]  %s23_s23, 128, %s25_s27, [#allocation3], %s823_s17, %s823_s17, %s824_s18  }
   0xd   :  { %s80_s10 = sshll.u32 %s919_s7, 4  ;;  %s828_s0 = smov [#allocation10]   ;;  %s81_s10 = int_to_ptr.hbm [resolvable:$true] %s80_s10 }
   0xe   :  { %58 = dma.hbm_to_vmem [thread:$0]  %s51_s25, 1024, %s53_s28, [#allocation6], %s823_s17, %s823_s17, %s824_s18  }
   0xf   :  { %s82_s11 = sshll.u32 %s828_s0, 4  ;;  %s83_s11 = int_to_ptr.vmem [resolvable:$true] %s82_s11 }
  0x10   :  { %88 = dma.hbm_to_vmem [thread:$0]  %s81_s10, 1024, %s83_s11, [#allocation9], %s823_s17, %s823_s17, %s824_s18  }
  0x11   :  { %814 = dma.done.wait [#allocation3], 128  }
  0x12   :  { %815 = vsyncadd [#allocation3], 4294967168 }
  0x13   :  { %816 = dma.done.wait [#allocation6], 2048  }
  0x14   :  { %817 = vsyncadd [#allocation6], 4294965248 }
  0x15   :  { %818 = dma.done.wait [#allocation9], 2048  }
  0x16   :  { %819 = vsyncadd [#allocation9], 4294965248  ;;  %v619_v0 = vld [vmem:[#allocation5 + $0x38] sm:$0xff]  ;;  %v618_v1 = vld [vmem:[#allocation5 + $0x30] sm:$0xff]  ;;  %s829_s16 = smov [#allocation11]   ;;  %s464_s19 = sshll.u32 %s921_s9, 4  ;;  %s465_s19 = int_to_ptr.hbm [resolvable:$true] %s464_s19 }
  0x17   :  { %187 = vmatpush.bf16.msra.mxu0 %v619_v0  ;;  %v627_v2 = vld [vmem:[#allocation7 + $0x38] sm:$0xff]  ;;  %v626_v3 = vld [vmem:[#allocation7 + $0x30] sm:$0xff]  ;;  %v617_v4 = vld [vmem:[#allocation5 + $0x28] sm:$0xff]  ;;  %s462_s17 = sshll.u32 %s829_s16, 4  ;;  %s830_s20 = smov 128   ;;  %s463_s17 = int_to_ptr.vmem [resolvable:$true] %s462_s17 }
  0x18   :  { %272 = vmatpush.bf16.msra.mxu1 %v627_v2  ;;  %v625_v5 = vld [vmem:[#allocation7 + $0x28] sm:$0xff]  ;;  %v616_v6 = vld [vmem:[#allocation5 + $0x20] sm:$0xff]  ;;  %v615_v7 = vld [vmem:[#allocation5 + $0x18] sm:$0xff]  ;;  %s831_s21 = smov 8  }
  0x19   :  { %v614_v8 = vld [vmem:[#allocation5 + $0x10] sm:$0xff]  ;;  %v613_v9 = vld [vmem:[#allocation5 + $0x8] sm:$0xff]  ;;  %v612_v10 = vld [vmem:[#allocation5] sm:$0xff] }
  0x1a   :  { %v611_v11 = vld [vmem:[#allocation2] sm:$0xff]  ;;  %v624_v12 = vld [vmem:[#allocation7 + $0x20] sm:$0xff]  ;;  %v622_v14 = vld [vmem:[#allocation7 + $0x10] sm:$0xff] }
  0x1b   :  { %188 = vmatpush.bf16.msra.mxu0 %v618_v1  ;;  %v623_v13 = vld [vmem:[#allocation7 + $0x18] sm:$0xff]  ;;  %v621_v15 = vld [vmem:[#allocation7 + $0x8] sm:$0xff]  ;;  %v620_v16 = vld [vmem:[#allocation7] sm:$0xff] }
  0x1c   :  { %273 = vmatpush.bf16.msra.mxu1 %v626_v3  ;;  %v635_v17 = vld [vmem:[#allocation8 + $0x38] sm:$0xff]  ;;  %v634_v18 = vld [vmem:[#allocation8 + $0x30] sm:$0xff]  ;;  %v633_v19 = vld [vmem:[#allocation8 + $0x28] sm:$0xff] }
  0x1d   :  { %357 = vmatpush.bf16.msra.mxu2 %v635_v17  ;;  %v654_v21 = vld [vmem:[%s914_s2] ss:$0 sm:$0xff]  ;;  %v632_v28 = vld [vmem:[#allocation8 + $0x20] sm:$0xff]  ;;  %v630_v30 = vld [vmem:[#allocation8 + $0x10] sm:$0xff] }
  0x1e   :  { %v631_v29 = vld [vmem:[#allocation8 + $0x18] sm:$0xff]  ;;  %v629_v31 = vld [vmem:[#allocation8 + $0x8] sm:$0xff]  ;;  %v628_v32 = vld [vmem:[#allocation8] sm:$0xff] }
  0x1f   :  { %189 = vmatpush.bf16.msra.mxu0 %v617_v4  ;;  %v643_v33 = vld [vmem:[#allocation10 + $0x38] sm:$0xff]  ;;  %v642_v34 = vld [vmem:[#allocation10 + $0x30] sm:$0xff]  ;;  %v641_v35 = vld [vmem:[#allocation10 + $0x28] sm:$0xff] }
  0x20   :  { %274 = vmatpush.bf16.msra.mxu1 %v625_v5  ;;  %442 = vmatpush.bf16.msra.mxu3 %v643_v33  ;;  %v655_v37 = vld [vmem:[%s916_s4] ss:$0 sm:$0xff]  ;;  %v640_v44 = vld [vmem:[#allocation10 + $0x20] sm:$0xff]  ;;  %v638_v46 = vld [vmem:[#allocation10 + $0x10] sm:$0xff] }
  0x21   :  { %358 = vmatpush.bf16.msra.mxu2 %v634_v18  ;;  %v639_v45 = vld [vmem:[#allocation10 + $0x18] sm:$0xff]  ;;  %v637_v47 = vld [vmem:[#allocation10 + $0x8] sm:$0xff]  ;;  %v636_v48 = vld [vmem:[#allocation10] sm:$0xff] }
  0x22   :  { %v656_v50 = vld [vmem:[%s918_s6] ss:$0 sm:$0xff] }
  0x23   :  { %190 = vmatpush.bf16.msra.mxu0 %v616_v6  ;;  %v657_v57 = vld [vmem:[%s920_s8] ss:$0 sm:$0xff] }
  0x24   :  { %275 = vmatpush.bf16.msra.mxu1 %v624_v12  ;;  %443 = vmatpush.bf16.msra.mxu3 %v642_v34 }
  0x25   :  { %359 = vmatpush.bf16.msra.mxu2 %v633_v19 }
  0x27   :  { %191 = vmatpush.bf16.msra.mxu0 %v615_v7 }
  0x28   :  { %276 = vmatpush.bf16.msra.mxu1 %v623_v13  ;;  %444 = vmatpush.bf16.msra.mxu3 %v641_v35 }
  0x29   :  { %360 = vmatpush.bf16.msra.mxu2 %v632_v28 }
  0x2b   :  { %192 = vmatpush.bf16.msra.mxu0 %v614_v8 }
  0x2c   :  { %277 = vmatpush.bf16.msra.mxu1 %v622_v14  ;;  %445 = vmatpush.bf16.msra.mxu3 %v640_v44 }
  0x2d   :  { %361 = vmatpush.bf16.msra.mxu2 %v631_v29 }
  0x2f   :  { %193 = vmatpush.bf16.msra.mxu0 %v613_v9 }
  0x30   :  { %278 = vmatpush.bf16.msra.mxu1 %v621_v15  ;;  %446 = vmatpush.bf16.msra.mxu3 %v639_v45 }
  0x31   :  { %362 = vmatpush.bf16.msra.mxu2 %v630_v30 }
  0x33   :  { %194 = vmatpush.bf16.msra.mxu0 %v612_v10 }
  0x34   :  { %279 = vmatpush.bf16.msra.mxu1 %v620_v16  ;;  %447 = vmatpush.bf16.msra.mxu3 %v638_v46 }
  0x35   :  { %363 = vmatpush.bf16.msra.mxu2 %v629_v31 }
  0x36   :  { %195 = vmatmul.bf16.vlgmr.msra.gmra.mxu0 %v611_v11 }
  0x38   :  { %448 = vmatpush.bf16.msra.mxu3 %v637_v47 }
  0x39   :  { %364 = vmatpush.bf16.msra.mxu2 %v628_v32 }
  0x3c   :  { %449 = vmatpush.bf16.msra.mxu3 %v636_v48 }
  0xb3   :  { %v196_v20 = vpop.f32.mrf.mxu0 }
  0xb4   :  { %v197_v22 = vadd.f32 %v654_v21, %v196_v20 }
  0xb6   :  { %658 = vtanh.f32 %v197_v22 }
  0xbb   :  { %v198_v23 = vpop.f32.mrf.mxu0 }
  0xbc   :  { %v199_v24 = vadd.f32 %v654_v21, %v198_v23  ;;  %v659_v25 = vpop.eup %658 }
  0xbe   :  { %660 = vtanh.f32 %v199_v24 }
  0xc4   :  { %v661_v26 = vpop.eup %660 }
  0xc5   :  { %v203_v27 = vpack.c.bf16 %v661_v26, %v659_v25 }
  0xc7   :  { %280 = vmatmul.bf16.vlgmr.msra.gmra.mxu1 %v203_v27 }
 0x144   :  { %v281_v36 = vpop.f32.mrf.mxu1 }
 0x145   :  { %v282_v38 = vadd.f32 %v655_v37, %v281_v36 }
 0x147   :  { %662 = vtanh.f32 %v282_v38 }
 0x14c   :  { %v283_v39 = vpop.f32.mrf.mxu1 }
 0x14d   :  { %v284_v40 = vadd.f32 %v655_v37, %v283_v39  ;;  %v663_v41 = vpop.eup %662 }
 0x14f   :  { %664 = vtanh.f32 %v284_v40 }
 0x155   :  { %v665_v42 = vpop.eup %664 }
 0x156   :  { %v288_v43 = vpack.c.bf16 %v665_v42, %v663_v41 }
 0x158   :  { %365 = vmatmul.bf16.vlgmr.msra.gmra.mxu2 %v288_v43 }
 0x1db   :  { %v366_v49 = vpop.f32.mrf.mxu2 }
 0x1dc   :  { %v367_v51 = vadd.f32 %v656_v50, %v366_v49 }
 0x1de   :  { %666 = vtanh.f32 %v367_v51 }
 0x1e3   :  { %v368_v52 = vpop.f32.mrf.mxu2 }
 0x1e4   :  { %v369_v53 = vadd.f32 %v656_v50, %v368_v52  ;;  %v667_v54 = vpop.eup %666 }
 0x1e6   :  { %668 = vtanh.f32 %v369_v53 }
 0x1ec   :  { %v669_v55 = vpop.eup %668 }
 0x1ed   :  { %v373_v56 = vpack.c.bf16 %v669_v55, %v667_v54 }
 0x1ef   :  { %450 = vmatmul.bf16.vlgmr.msra.gmra.mxu3 %v373_v56 }
 0x272   :  { %v451_v58 = vpop.f32.mrf.mxu3 }
 0x273   :  { %v452_v59 = vadd.f32 %v657_v57, %v451_v58 }
 0x275   :  { %456 = vst [vmem:[#allocation11] sm:$0xff] %v452_v59 }
 0x27a   :  { %v453_v60 = vpop.f32.mrf.mxu3 }
 0x27b   :  { %v454_v61 = vadd.f32 %v657_v57, %v453_v60 }
 0x27d   :  { %457 = vst [vmem:[#allocation11 + $0x8] sm:$0xff] %v454_v61 }
 0x27e   :  { %470 = dma.vmem_to_hbm [thread:$0]  %s463_s17, 256, %s465_s19, [#allocation4], %s830_s20, %s830_s20, %s831_s21  }
 0x27f   :  { %820 = dma.done.wait [#allocation4], 256  }
 0x280   :  { %821 = vsyncadd [#allocation4], 4294967040 }
 0x281   :  { %475 = vsyncpa [#allocation3], 1 }
 0x282   :  { %476 = vsyncpa [#allocation6], 1 }
 0x283   :  { %477 = vsyncpa [#allocation9], 1 }
 0x284   :  { %478 = vsyncpa [#allocation4], 1 }

</bundles_post_ra>
